<compile_context>
chip_gen: v6e
topology: v6e:2x2x1
jax: 0.10.0
libtpu: 0.0.40
codegen_flags: <defaults>
</compile_context>

<pallas_src>
import functools

import jax
import jax.numpy as jnp
from jax.experimental import pallas as pl
from jax.experimental.pallas import tpu as pltpu


def _round_up(v, m):
    return (v + m - 1) // m * m


def _adapter_kernel(x_ref, w1_ref, b1_ref, w2_ref, b2_ref, o_ref):
    # x_ref:  (block_m, E_pad)   w1_ref: (E_pad, R_pad)   b1_ref: (1, R_pad)
    # w2_ref: (R_pad, E_pad)     b2_ref: (1, E_pad)       o_ref:  (block_m, E_pad)
    x = x_ref[...]

    # ln1: x @ W1 + b1   (MXU, f32 accumulation)
    h = jnp.dot(x, w1_ref[...], preferred_element_type=jnp.float32)
    h = h + b1_ref[...].astype(jnp.float32)

    # QuickGELU: h * sigmoid(1.702 * h)   (VPU mul + EUP sigmoid, f32)
    h = h * jax.nn.sigmoid(1.702 * h)

    # dropout(p=0) == identity at inference; nothing to do.
    # TODO(synk): dropout with p > 0 (training) would need pltpu.prng_* state;
    # explicit `identity=` tensors / set_sample_config width-sampling are also
    # not wired into the kernel (default inference path identity = x only).

    # ln2: h @ W2 + b2, then residual add (identity defaults to x).
    out = jnp.dot(h.astype(w2_ref.dtype), w2_ref[...],
                  preferred_element_type=jnp.float32)
    out = out + b2_ref[...].astype(jnp.float32) + x.astype(jnp.float32)

    o_ref[...] = out.astype(o_ref.dtype)


def prepare_adapter_params(w1, b1, w2, b2):
    """Pad weights/biases once to lane-dense (multiple-of-128) feature dims.

    w1: [E, R] (pre-transposed ln1 weight), b1: [R]
    w2: [R, E] (pre-transposed ln2 weight), b2: [E]
    """
    E, R = w1.shape
    E_pad = _round_up(E, 128)
    R_pad = _round_up(R, 128)
    w1p = jnp.pad(w1, ((0, E_pad - E), (0, R_pad - R)))
    b1p = jnp.pad(b1.reshape(1, R), ((0, 0), (0, R_pad - R)))
    w2p = jnp.pad(w2, ((0, R_pad - R), (0, E_pad - E)))
    b2p = jnp.pad(b2.reshape(1, E), ((0, 0), (0, E_pad - E)))
    return w1p, b1p, w2p, b2p


def _pick_block_m(M, E_pad, R_pad, itemsize):
    """Largest multiple-of-8 row tile whose double-buffered in/out tiles plus
    f32 intermediates fit well under a 32 MiB working budget."""
    budget = 24 << 20  # leave headroom under the 32 MiB scoped default
    # per-row bytes: in tile + out tile (double-buffered) + f32 h/acc scratch
    per_row = 4 * E_pad * itemsize + 4 * (E_pad + R_pad)
    bm = budget // max(per_row, 1)
    bm = min(bm, 2048, _round_up(M, 8))  # no point tiling past M
    bm = max(8, (bm // 8) * 8)
    return int(bm)


@functools.partial(jax.jit, static_argnames=("block_m",))
def adapter_super_forward(x, w1p, b1p, w2p, b2p, block_m=None):
    """x: [B, N, E]; padded params from prepare_adapter_params.

    Returns x + adapter(x)  (AdapterSuper.forward with identity=None).
    """
    B, N, E = x.shape
    E_pad, R_pad = w1p.shape
    M = B * N
    itemsize = jnp.dtype(x.dtype).itemsize

    # --- token-axis tiling: multiple of 8 rows, sized from the VMEM budget. ---
    if block_m is None:
        block_m = _pick_block_m(M, E_pad, R_pad, itemsize)
    block_m = max(8, _round_up(int(block_m), 8))
    M_pad = _round_up(M, block_m)
    grid = (M_pad // block_m,)

    # --- pad x to (M_pad, E_pad): full (8,128)-aligned, lane-dense tiles. ---
    x2d = x.reshape(M, E)
    if (M_pad, E_pad) != (M, E):
        x2d = jnp.pad(x2d, ((0, M_pad - M), (0, E_pad - E)))

    # --- VMEM budget (double-buffered in/out tiles + resident weights). ---
    w_itemsize = jnp.dtype(w1p.dtype).itemsize
    tile_bytes = block_m * E_pad * itemsize
    weight_bytes = (E_pad * R_pad + R_pad * E_pad + R_pad + E_pad) * w_itemsize
    scratch_f32 = 4 * block_m * (E_pad + R_pad)  # f32 intermediates in the body
    vmem_est = 4 * tile_bytes + 2 * weight_bytes + 2 * scratch_f32
    vmem_limit_bytes = int(min(max(2 * vmem_est, 32 << 20), 64 << 20))

    # --- cost hint for XLA's scheduler (mem-bound custom call). ---
    flops = 4 * M_pad * E_pad * R_pad + 8 * M_pad * R_pad + 2 * M_pad * E_pad
    bytes_accessed = 2 * M_pad * E_pad * itemsize + weight_bytes
    cost = pl.CostEstimate(flops=int(flops),
                           transcendentals=int(M_pad * R_pad),
                           bytes_accessed=int(bytes_accessed))

    out2d = pl.pallas_call(
        _adapter_kernel,
        out_shape=jax.ShapeDtypeStruct((M_pad, E_pad), x.dtype),
        grid_spec=pltpu.PrefetchScalarGridSpec(
            num_scalar_prefetch=0,
            grid=grid,
            in_specs=[
                pl.BlockSpec((block_m, E_pad), lambda i: (i, 0)),  # x tile
                pl.BlockSpec((E_pad, R_pad), lambda i: (0, 0)),    # W1 (resident)
                pl.BlockSpec((1, R_pad), lambda i: (0, 0)),        # b1
                pl.BlockSpec((R_pad, E_pad), lambda i: (0, 0)),    # W2 (resident)
                pl.BlockSpec((1, E_pad), lambda i: (0, 0)),        # b2
            ],
            out_specs=pl.BlockSpec((block_m, E_pad), lambda i: (i, 0)),
        ),
        compiler_params=pltpu.CompilerParams(
            dimension_semantics=("parallel",),
            vmem_limit_bytes=vmem_limit_bytes,
        ),
        cost_estimate=cost,
    )(x2d, w1p, b1p, w2p, b2p)

    return out2d[:M, :E].reshape(B, N, E)


def init_adapter_params(key, embed_dims, reduction_dims, dtype=jnp.float32):
    """Matches the module's init_weights(): xavier_uniform_ on Linear weights,
    normal(std=1e-6) on biases. Weights stored pre-transposed for row-major dots."""
    k1, k2, k3, k4 = jax.random.split(key, 4)

    def xavier_uniform(k, fan_in, fan_out, shape):
        limit = (6.0 / (fan_in + fan_out)) ** 0.5
        return jax.random.uniform(k, shape, dtype, minval=-limit, maxval=limit)

    # PyTorch ln1.weight is [R, E]; stored transposed [E, R] for x @ W1.
    w1 = xavier_uniform(k1, embed_dims, reduction_dims, (embed_dims, reduction_dims))
    b1 = (1e-6 * jax.random.normal(k2, (reduction_dims,))).astype(dtype)
    # PyTorch ln2.weight is [E, R]; stored transposed [R, E] for h @ W2.
    w2 = xavier_uniform(k3, reduction_dims, embed_dims, (reduction_dims, embed_dims))
    b2 = (1e-6 * jax.random.normal(k4, (embed_dims,))).astype(dtype)
    return w1, b1, w2, b2


def _reference(x, w1, b1, w2, b2):
    h = x @ w1 + b1
    h = h * jax.nn.sigmoid(1.702 * h)
    return x + (h @ w2 + b2)  # forward returns identity + out (identity = x)


if __name__ == "__main__":
    key = jax.random.PRNGKey(0)
    kx, kp = jax.random.split(key)

    # Small shapes consistent with the module.
    batch, seq, embed_dims, reduction_dims = 2, 8, 32, 16
    x = jax.random.normal(kx, (batch, seq, embed_dims), dtype=jnp.float32)
    w1, b1, w2, b2 = init_adapter_params(kp, embed_dims, reduction_dims)
    params = prepare_adapter_params(w1, b1, w2, b2)

    ref = _reference(x, w1, b1, w2, b2)

    # 1) Default config (auto block_m from VMEM budget).
    out = jax.block_until_ready(adapter_super_forward(x, *params))
    assert out.shape == (batch, seq, embed_dims)
    assert jnp.allclose(out, ref, atol=1e-5, rtol=1e-5), "f32 mismatch vs reference"

    # 2) Multi-step grid / padded-M path (block_m=8 -> grid of 2 steps here).
    out_tiled = jax.block_until_ready(adapter_super_forward(x, *params, block_m=8))
    assert jnp.allclose(out_tiled, ref, atol=1e-5, rtol=1e-5), "tiled mismatch"

    # 3) bf16 I/O path (halves HBM traffic for this memory-bound kernel;
    #    MXU still accumulates in f32).
    xb = x.astype(jnp.bfloat16)
    pb = tuple(p.astype(jnp.bfloat16) for p in params)
    out_bf16 = jax.block_until_ready(adapter_super_forward(xb, *pb))
    assert out_bf16.dtype == jnp.bfloat16
    assert jnp.allclose(out_bf16.astype(jnp.float32), ref, atol=5e-2, rtol=5e-2), \
        "bf16 mismatch vs f32 reference"

    print("KERNEL_OK")
</pallas_src>

<mosaic_0001>
module attributes {stable_mosaic.version = 11 : i64} {
  func.func @_adapter_kernel(%arg0: i32, %arg1: memref<16x128xf32, #tpu.memory_space<vmem>>, %arg2: memref<128x128xf32, #tpu.memory_space<vmem>>, %arg3: memref<1x128xf32, #tpu.memory_space<vmem>>, %arg4: memref<128x128xf32, #tpu.memory_space<vmem>>, %arg5: memref<1x128xf32, #tpu.memory_space<vmem>>, %arg6: memref<16x128xf32, #tpu.memory_space<vmem>>) attributes {dimension_semantics = [#tpu.dimension_semantics<parallel>], iteration_bounds = array<i64: 1>, scalar_prefetch = 0 : i64, scratch_operands = 0 : i64, tpu.core_type = #tpu.core_type<tc>, window_params = [{transform_indices = @transform_0, window_bounds = array<i64: 16, 128>}, {pipeline_mode = #tpu.pipeline_mode<synchronous>, transform_indices = @transform_1, window_bounds = array<i64: 128, 128>}, {pipeline_mode = #tpu.pipeline_mode<synchronous>, transform_indices = @transform_2, window_bounds = array<i64: 1, 128>}, {pipeline_mode = #tpu.pipeline_mode<synchronous>, transform_indices = @transform_3, window_bounds = array<i64: 128, 128>}, {pipeline_mode = #tpu.pipeline_mode<synchronous>, transform_indices = @transform_4, window_bounds = array<i64: 1, 128>}, {transform_indices = @transform_5, window_bounds = array<i64: 16, 128>}]} {
    %c0 = arith.constant 0 : index
    %c0_0 = arith.constant 0 : index
    %0 = vector.load %arg1[%c0, %c0_0] : memref<16x128xf32, #tpu.memory_space<vmem>>, vector<16x128xf32>
    %c0_1 = arith.constant 0 : index
    %c0_2 = arith.constant 0 : index
    %1 = vector.load %arg2[%c0_1, %c0_2] : memref<128x128xf32, #tpu.memory_space<vmem>>, vector<128x128xf32>
    %cst = arith.constant dense<0.000000e+00> : vector<16x128xf32>
    %2 = tpu.matmul %0, %1, %cst {dimension_numbers = #tpu.dot_dimension_numbers<[1], [0], [0], [1], [0, 0, 1, 1], [], []>} : vector<16x128xf32>, vector<128x128xf32>, vector<16x128xf32> -> vector<16x128xf32>
    %c0_3 = arith.constant 0 : index
    %c0_4 = arith.constant 0 : index
    %3 = vector.load %arg3[%c0_3, %c0_4] : memref<1x128xf32, #tpu.memory_space<vmem>>, vector<1x128xf32>
    %4 = vector.broadcast %3 : vector<1x128xf32> to vector<16x128xf32>
    %5 = arith.addf %2, %4 : vector<16x128xf32>
    %cst_5 = arith.constant 1.702000e+00 : f32
    %6 = vector.broadcast %cst_5 : f32 to vector<16x128xf32>
    %7 = arith.mulf %6, %5 : vector<16x128xf32>
    %8 = arith.negf %7 : vector<16x128xf32>
    %9 = math.exp %8 : vector<16x128xf32>
    %cst_6 = arith.constant 1.000000e+00 : f32
    %10 = vector.broadcast %cst_6 : f32 to vector<16x128xf32>
    %11 = arith.addf %10, %9 : vector<16x128xf32>
    %12 = arith.divf %10, %11 : vector<16x128xf32>
    %13 = arith.mulf %5, %12 : vector<16x128xf32>
    %c0_7 = arith.constant 0 : index
    %c0_8 = arith.constant 0 : index
    %14 = vector.load %arg4[%c0_7, %c0_8] : memref<128x128xf32, #tpu.memory_space<vmem>>, vector<128x128xf32>
    %cst_9 = arith.constant dense<0.000000e+00> : vector<16x128xf32>
    %15 = tpu.matmul %13, %14, %cst_9 {dimension_numbers = #tpu.dot_dimension_numbers<[1], [0], [0], [1], [0, 0, 1, 1], [], []>} : vector<16x128xf32>, vector<128x128xf32>, vector<16x128xf32> -> vector<16x128xf32>
    %c0_10 = arith.constant 0 : index
    %c0_11 = arith.constant 0 : index
    %16 = vector.load %arg5[%c0_10, %c0_11] : memref<1x128xf32, #tpu.memory_space<vmem>>, vector<1x128xf32>
    %17 = vector.broadcast %16 : vector<1x128xf32> to vector<16x128xf32>
    %18 = arith.addf %15, %17 : vector<16x128xf32>
    %19 = arith.addf %18, %0 : vector<16x128xf32>
    %c0_12 = arith.constant 0 : index
    %c0_13 = arith.constant 0 : index
    %20 = vector.load %arg6[%c0_12, %c0_13] : memref<16x128xf32, #tpu.memory_space<vmem>>, vector<16x128xf32>
    tpu.vector_store %arg6[%c0_12, %c0_13], %19 {strides = array<i32>} : memref<16x128xf32, #tpu.memory_space<vmem>>, vector<16x128xf32>,
    return
  }
  func.func @transform_0(%arg0: i32) -> (i32, i32) {
    %c0_i32 = arith.constant 0 : i32
    %c0_i32_0 = arith.constant 0 : i32
    return %arg0, %c0_i32 : i32, i32
  }
  func.func @transform_1(%arg0: i32) -> (i32, i32) {
    %c0_i32 = arith.constant 0 : i32
    %c0_i32_0 = arith.constant 0 : i32
    %c0_i32_1 = arith.constant 0 : i32
    return %c0_i32, %c0_i32_0 : i32, i32
  }
  func.func @transform_2(%arg0: i32) -> (i32, i32) {
    %c0_i32 = arith.constant 0 : i32
    %c0_i32_0 = arith.constant 0 : i32
    %c0_i32_1 = arith.constant 0 : i32
    return %c0_i32, %c0_i32_0 : i32, i32
  }
  func.func @transform_3(%arg0: i32) -> (i32, i32) {
    %c0_i32 = arith.constant 0 : i32
    %c0_i32_0 = arith.constant 0 : i32
    %c0_i32_1 = arith.constant 0 : i32
    return %c0_i32, %c0_i32_0 : i32, i32
  }
  func.func @transform_4(%arg0: i32) -> (i32, i32) {
    %c0_i32 = arith.constant 0 : i32
    %c0_i32_0 = arith.constant 0 : i32
    %c0_i32_1 = arith.constant 0 : i32
    return %c0_i32, %c0_i32_0 : i32, i32
  }
  func.func @transform_5(%arg0: i32) -> (i32, i32) {
    %c0_i32 = arith.constant 0 : i32
    %c0_i32_0 = arith.constant 0 : i32
    return %arg0, %c0_i32 : i32, i32
  }
}

</mosaic_0001>

<bundles_post_ra>
// kernel: adapter_super_forward.1
= control target key start
LH: loop header
LB: loop body
LE: loop exit
PB: predicated region body
PF: predicated region fallthrough
CT: control target
= control target key end

     0   :  { %10 = vsyncpa [#allocation3], 0  ;;  %s504_s0 = inlined_call_operand.vmem [shape: f32[16,128], index: 0, kind: input, shape index: {}]   ;;  %s505_s1 = inlined_call_operand.hbm [shape: f32[128,128], index: 1, kind: input, shape index: {}]   ;;  %s506_s2 = inlined_call_operand.vmem [shape: f32[1,128], index: 2, kind: input, shape index: {}]   ;;  %s507_s3 = inlined_call_operand.hbm [shape: f32[128,128], index: 3, kind: input, shape index: {}]   ;;  %s508_s4 = inlined_call_operand.vmem [shape: f32[1,128], index: 4, kind: input, shape index: {}]   ;;  %s509_s5 = inlined_call_operand.vmem [shape: f32[16,128], index: 5, kind: output, shape index: {}]  }
   0x1   :  { %11 = vsyncpa [#allocation5], 0  ;;  %s438_s18 = smov [#allocation2]  }
   0x2   :  { %s19_s19 = sshll.u32 %s438_s18, 4  ;;  %s20_s19 = int_to_ptr.vmem [resolvable:$true] %s19_s19 }
   0x3   :  { %s402_s20 = scalar_lea.vmem %s20_s19, 2048  ;;  %p407_p1 = scmp.lt.s32.totalorder %s20_s19, %s20_s19 }
   0x4   :  { %p403_p0 = scmp.ne.s32.totalorder %s20_s19, %s402_s20  ;;  %p408_p2 = scmp.lt.s32.totalorder %s402_s20, %s402_s20 }
   0x6   :  { %p409_p3 = por %p408_p2, %p407_p1 }
   0x8   :  { %p410_p4 = pnand %p409_p3, %p403_p0 }
   0xa   :  { %413 = shalt.err (!%p410_p4)
}
   0xb   :  { %s439_s21 = smov 128   ;;  %s440_s22 = smov 8  }
   0xc   :  { %25 = dma.hbm_to_vmem [thread:$0]  %s505_s1, 2048, %s20_s19, [#allocation3], %s439_s21, %s439_s21, %s440_s22  }
   0xd   :  { %s441_s25 = smov [#allocation4]  }
   0xe   :  { %s33_s26 = sshll.u32 %s441_s25, 4  ;;  %s34_s26 = int_to_ptr.vmem [resolvable:$true] %s33_s26 }
   0xf   :  { %s422_s27 = scalar_lea.vmem %s34_s26, 2048  ;;  %p427_p6 = scmp.lt.s32.totalorder %s34_s26, %s34_s26 }
  0x10   :  { %p423_p5 = scmp.ne.s32.totalorder %s34_s26, %s422_s27  ;;  %p428_p7 = scmp.lt.s32.totalorder %s422_s27, %s422_s27 }
  0x12   :  { %p429_p8 = por %p428_p7, %p427_p6 }
  0x14   :  { %p430_p9 = pnand %p429_p8, %p423_p5 }
  0x16   :  { %433 = shalt.err (!%p430_p9)
}
  0x17   :  { %39 = dma.hbm_to_vmem [thread:$0]  %s507_s3, 2048, %s34_s26, [#allocation5], %s439_s21, %s439_s21, %s440_s22  }
  0x18   :  { %434 = dma.done.wait [#allocation3], 2048  }
  0x19   :  { %435 = vsyncadd [#allocation3], 4294965248 }
  0x1a   :  { %436 = dma.done.wait [#allocation5], 2048  }
  0x1b   :  { %437 = vsyncadd [#allocation5], 4294965248  ;;  %v65_v0 = vld [vmem:[#allocation2 + $0x78] sm:$0xff]  ;;  %v64_v1 = vld [vmem:[#allocation2 + $0x70] sm:$0xff] }
  0x1c   :  { %312 = vmatprep.subr.mxu0 %v65_v0  ;;  %v63_v2 = vld [vmem:[#allocation2 + $0x68] sm:$0xff]  ;;  %v62_v3 = vld [vmem:[#allocation2 + $0x60] sm:$0xff]  ;;  %v61_v5 = vld [vmem:[#allocation2 + $0x58] sm:$0xff] }
  0x1d   :  { %313 = vmatpush3.msra.mxu0 %v65_v0  ;;  %v481_v4 = vld [vmem:[%s504_s0] sm:$0xff]  ;;  %v60_v6 = vld [vmem:[#allocation2 + $0x50] sm:$0xff]  ;;  %v59_v7 = vld [vmem:[#allocation2 + $0x48] sm:$0xff] }
  0x1e   :  { %314 = vmatprep.subr.mxu0 %v64_v1  ;;  %344 = vmatprep.mubr.f32.mxu0 %v481_v4  ;;  %v58_v8 = vld [vmem:[#allocation2 + $0x40] sm:$0xff]  ;;  %v57_v9 = vld [vmem:[#allocation2 + $0x38] sm:$0xff]  ;;  %v56_v10 = vld [vmem:[#allocation2 + $0x30] sm:$0xff] }
  0x1f   :  { %315 = vmatpush3.msra.mxu0 %v64_v1  ;;  %v55_v11 = vld [vmem:[#allocation2 + $0x28] sm:$0xff]  ;;  %v54_v12 = vld [vmem:[#allocation2 + $0x20] sm:$0xff]  ;;  %v53_v13 = vld [vmem:[#allocation2 + $0x18] sm:$0xff] }
  0x20   :  { %316 = vmatprep.subr.mxu0 %v63_v2  ;;  %v52_v14 = vld [vmem:[#allocation2 + $0x10] sm:$0xff]  ;;  %v51_v15 = vld [vmem:[#allocation2 + $0x8] sm:$0xff]  ;;  %v50_v16 = vld [vmem:[#allocation2] sm:$0xff] }
  0x21   :  { %317 = vmatpush3.msra.mxu0 %v63_v2  ;;  %v487_v17 = vld [vmem:[%s504_s0 + $0x8] sm:$0xff]  ;;  %v179_v18 = vld [vmem:[#allocation4 + $0x78] sm:$0xff]  ;;  %v178_v19 = vld [vmem:[#allocation4 + $0x70] sm:$0xff] }
  0x22   :  { %318 = vmatprep.subr.mxu0 %v62_v3  ;;  %347 = vmatprep.subr.mxu1 %v179_v18  ;;  %v177_v20 = vld [vmem:[#allocation4 + $0x68] sm:$0xff]  ;;  %v176_v21 = vld [vmem:[#allocation4 + $0x60] sm:$0xff]  ;;  %v175_v22 = vld [vmem:[#allocation4 + $0x58] sm:$0xff] }
  0x23   :  { %319 = vmatpush3.msra.mxu0 %v62_v3  ;;  %348 = vmatpush3.msra.mxu1 %v179_v18  ;;  %v174_v23 = vld [vmem:[#allocation4 + $0x50] sm:$0xff]  ;;  %v173_v24 = vld [vmem:[#allocation4 + $0x48] sm:$0xff]  ;;  %v172_v25 = vld [vmem:[#allocation4 + $0x40] sm:$0xff] }
  0x24   :  { %320 = vmatprep.subr.mxu0 %v61_v5  ;;  %349 = vmatprep.subr.mxu1 %v178_v19  ;;  %v171_v26 = vld [vmem:[#allocation4 + $0x38] sm:$0xff]  ;;  %v170_v27 = vld [vmem:[#allocation4 + $0x30] sm:$0xff]  ;;  %v169_v28 = vld [vmem:[#allocation4 + $0x28] sm:$0xff] }
  0x25   :  { %321 = vmatpush3.msra.mxu0 %v61_v5  ;;  %350 = vmatpush3.msra.mxu1 %v178_v19  ;;  %v168_v29 = vld [vmem:[#allocation4 + $0x20] sm:$0xff]  ;;  %v167_v30 = vld [vmem:[#allocation4 + $0x18] sm:$0xff]  ;;  %v166_v31 = vld [vmem:[#allocation4 + $0x10] sm:$0xff] }
  0x26   :  { %322 = vmatprep.subr.mxu0 %v60_v6  ;;  %351 = vmatprep.subr.mxu1 %v177_v20  ;;  %v165_v32 = vld [vmem:[#allocation4 + $0x8] sm:$0xff]  ;;  %v164_v33 = vld [vmem:[#allocation4] sm:$0xff] }
  0x27   :  { %323 = vmatpush3.msra.mxu0 %v60_v6  ;;  %352 = vmatpush3.msra.mxu1 %v177_v20  ;;  %v272_v34 = vld [vmem:[%s506_s2] ss:$0 sm:$0xff] }
  0x28   :  { %324 = vmatprep.subr.mxu0 %v59_v7  ;;  %353 = vmatprep.subr.mxu1 %v176_v21  ;;  %v275_v51 = vld [vmem:[%s508_s4] ss:$0 sm:$0xff] }
  0x29   :  { %325 = vmatpush3.msra.mxu0 %v59_v7  ;;  %354 = vmatpush3.msra.mxu1 %v176_v21 }
  0x2a   :  { %326 = vmatprep.subr.mxu0 %v58_v8  ;;  %355 = vmatprep.subr.mxu1 %v175_v22 }
  0x2b   :  { %327 = vmatpush3.msra.mxu0 %v58_v8  ;;  %356 = vmatpush3.msra.mxu1 %v175_v22 }
  0x2c   :  { %328 = vmatprep.subr.mxu0 %v57_v9  ;;  %357 = vmatprep.subr.mxu1 %v174_v23 }
  0x2d   :  { %329 = vmatpush3.msra.mxu0 %v57_v9  ;;  %358 = vmatpush3.msra.mxu1 %v174_v23 }
  0x2e   :  { %330 = vmatprep.subr.mxu0 %v56_v10  ;;  %359 = vmatprep.subr.mxu1 %v173_v24 }
  0x2f   :  { %331 = vmatpush3.msra.mxu0 %v56_v10  ;;  %360 = vmatpush3.msra.mxu1 %v173_v24 }
  0x30   :  { %332 = vmatprep.subr.mxu0 %v55_v11  ;;  %361 = vmatprep.subr.mxu1 %v172_v25 }
  0x31   :  { %333 = vmatpush3.msra.mxu0 %v55_v11  ;;  %362 = vmatpush3.msra.mxu1 %v172_v25 }
  0x32   :  { %334 = vmatprep.subr.mxu0 %v54_v12  ;;  %363 = vmatprep.subr.mxu1 %v171_v26 }
  0x33   :  { %335 = vmatpush3.msra.mxu0 %v54_v12  ;;  %364 = vmatpush3.msra.mxu1 %v171_v26 }
  0x34   :  { %336 = vmatprep.subr.mxu0 %v53_v13  ;;  %365 = vmatprep.subr.mxu1 %v170_v27 }
  0x35   :  { %337 = vmatpush3.msra.mxu0 %v53_v13  ;;  %366 = vmatpush3.msra.mxu1 %v170_v27 }
  0x36   :  { %338 = vmatprep.subr.mxu0 %v52_v14  ;;  %367 = vmatprep.subr.mxu1 %v169_v28 }
  0x37   :  { %339 = vmatpush3.msra.mxu0 %v52_v14  ;;  %368 = vmatpush3.msra.mxu1 %v169_v28 }
  0x38   :  { %340 = vmatprep.subr.mxu0 %v51_v15  ;;  %369 = vmatprep.subr.mxu1 %v168_v29 }
  0x39   :  { %341 = vmatpush3.msra.mxu0 %v51_v15  ;;  %370 = vmatpush3.msra.mxu1 %v168_v29 }
  0x3a   :  { %342 = vmatprep.subr.mxu0 %v50_v16  ;;  %371 = vmatprep.subr.mxu1 %v167_v30 }
  0x3b   :  { %343 = vmatpush3.msra.mxu0 %v50_v16  ;;  %372 = vmatpush3.msra.mxu1 %v167_v30 }
  0x3c   :  { %345 = vmatmul.mubr.f32.vlgmr.msra.gmra.mxu0 %v487_v17  ;;  %373 = vmatprep.subr.mxu1 %v166_v31 }
  0x3d   :  { %374 = vmatpush3.msra.mxu1 %v166_v31 }
  0x3e   :  { %375 = vmatprep.subr.mxu1 %v165_v32 }
  0x3f   :  { %376 = vmatpush3.msra.mxu1 %v165_v32 }
  0x40   :  { %377 = vmatprep.subr.mxu1 %v164_v33 }
  0x41   :  { %378 = vmatpush3.msra.mxu1 %v164_v33 }
  0xfc   :  { %v346_v35 = vpop.f32.mrf.mxu0 }
  0xfd   :  { %v145_v36 = vadd.f32 %v346_v35, %v272_v34 }
  0xfe   :  { %v139_v37 = vpop.f32.mrf.mxu0 }
  0xff   :  { %v274_v38 = vmul.f32 -1.702, %v145_v36  ;;  %v140_v39 = vadd.f32 %v272_v34, %v139_v37 }
 0x101   :  { %v154_v40 = vmul.f32 1.442695, %v274_v38  ;;  %v273_v41 = vmul.f32 -1.702, %v140_v39 }
 0x103   :  { %386 = vpow2.f32 %v154_v40  ;;  %v152_v42 = vmul.f32 1.442695, %v273_v41 }
 0x105   :  { %388 = vpow2.f32 %v152_v42 }
 0x110   :  { %v387_v43 = vpop.eup %386 }
 0x111   :  { %v157_v44 = vadd.f32 1.0, %v387_v43 }
 0x112   :  { %v389_v45 = vpop.eup %388 }
 0x113   :  { %v156_v46 = vadd.f32 1.0, %v389_v45  ;;  %390 = vrcp.f32 %v157_v44 }
 0x115   :  { %392 = vrcp.f32 %v156_v46 }
 0x120   :  { %v391_v47 = vpop.eup %390 }
 0x121   :  { %v163_v50 = vmul.f32 %v391_v47, %v145_v36 }
 0x122   :  { %v393_v48 = vpop.eup %392 }
 0x123   :  { %v162_v49 = vmul.f32 %v393_v48, %v140_v39 }
 0x125   :  { %379 = vmatprep.mubr.f32.mxu1 %v162_v49 }
 0x126   :  { %380 = vmatmul.mubr.f32.vlgmr.msra.gmra.mxu1 %v163_v50 }
 0x1e6   :  { %v381_v52 = vpop.f32.mrf.mxu1 }
 0x1e7   :  { %v259_v53 = vadd.f32 %v381_v52, %v275_v51 }
 0x1e8   :  { %v253_v54 = vpop.f32.mrf.mxu1 }
 0x1e9   :  { %v263_v55 = vadd.f32 %v259_v53, %v487_v17  ;;  %v254_v56 = vadd.f32 %v275_v51, %v253_v54 }
 0x1eb   :  { %265 = vst [vmem:[%s509_s5 + $0x8] sm:$0xff] %v263_v55  ;;  %v262_v57 = vadd.f32 %v254_v56, %v481_v4 }
 0x1ed   :  { %264 = vst [vmem:[%s509_s5] sm:$0xff] %v262_v57 }
 0x1ee   :  { %270 = vsyncpa [#allocation3], 1 }
 0x1ef   :  { %271 = vsyncpa [#allocation5], 1 }

</bundles_post_ra>
